<compile_context>
chip_gen: v6e
topology: v6e:2x2x1
jax: 0.10.0
libtpu: 0.0.40
codegen_flags: <defaults>
</compile_context>

<pallas_src>
import jax
import jax.numpy as jnp
from jax.experimental import pallas as pl
from jax.experimental.pallas import tpu as pltpu


def _round_up(n, m):
    return ((n + m - 1) // m) * m


def fcnet_kernel(x_ref, w1_ref, b1_ref, w2_ref, b2_ref, o_ref):
    # Cast the x tile to bf16 in VMEM (weights already bf16): native MXU path.
    x = x_ref[...].astype(jnp.bfloat16)
    # h = relu(x @ W1 + b1)   (W1 stored (dim_in, dh_p)); f32 accumulate.
    h = jnp.dot(x, w1_ref[...], preferred_element_type=jnp.float32)
    h = jnp.maximum(h + b1_ref[...], 0.0)          # f32 epilogue; b1 broadcasts
    # out = h @ W2 + b2       (W2 stored (dh_p, dout_p))
    out = jnp.dot(h.astype(jnp.bfloat16), w2_ref[...],
                  preferred_element_type=jnp.float32)
    o_ref[...] = (out + b2_ref[...]).astype(o_ref.dtype)


def prepare_params(w1, b1, w2, b2):
    """One-time packing of PyTorch-layout params (not on the hot path).

    w1: (dim_hidden, dim_in), b1: (dim_hidden,),
    w2: (dim_out, dim_hidden), b2: (dim_out,).
    Weights are transposed to (in, out) layout, cast to bf16 and zero-padded so
    hidden/output lane dims are multiples of 128.  dim_in is NOT padded: the x
    block uses the full last dim, so x never needs a column pad.
    """
    dim_hidden, dim_in = w1.shape
    dim_out = w2.shape[0]
    dh_p = _round_up(dim_hidden, 128)
    dout_p = _round_up(dim_out, 128)

    w1p = (jnp.zeros((dim_in, dh_p), jnp.bfloat16)
           .at[:, :dim_hidden].set(w1.T.astype(jnp.bfloat16)))
    b1p = jnp.zeros((1, dh_p), jnp.float32).at[0, :dim_hidden].set(b1)
    w2p = (jnp.zeros((dh_p, dout_p), jnp.bfloat16)
           .at[:dim_hidden, :dim_out].set(w2.T.astype(jnp.bfloat16)))
    b2p = jnp.zeros((1, dout_p), jnp.float32).at[0, :dim_out].set(b2)

    return {
        "w1": w1p, "b1": b1p, "w2": w2p, "b2": b2p,
        "dim_in": dim_in, "dim_hidden": dim_hidden, "dim_out": dim_out,
    }


def _batch_tile(B, block_b):
    """Sublane-aligned batch tile; large for MXU fill, but capped near B/2
    (never below 256 rows) so the parallel axis has >=2 steps for v7x's 2 TCs."""
    tb = min(block_b, _round_up(B, 8))
    half = _round_up(pl.cdiv(B, 2), 8)
    if half >= 256:
        tb = min(tb, half)
    return tb


def fcnet_forward(x, params, *, block_b=512):
    """x: (B, dim_in) float32. Returns (B, dim_out) = relu(x@W1.T+b1)@W2.T+b2."""
    B, dim_in = x.shape
    assert dim_in == params["dim_in"]
    w1p, b1p, w2p, b2p = params["w1"], params["b1"], params["w2"], params["b2"]
    dh_p = w1p.shape[1]
    dout_p = w2p.shape[1]
    dim_out = params["dim_out"]

    tb = _batch_tile(B, block_b)
    grid = (pl.cdiv(B, tb),)

    # VMEM budget from actual footprint: x/out tiles double-buffered by the
    # pipeline, grid-invariant weights resident, plus the f32 hidden slab.
    def _nbytes(a):
        return a.size * a.dtype.itemsize
    est = (2 * tb * dim_in * x.dtype.itemsize
           + 2 * tb * dout_p * 4
           + 2 * (_nbytes(w1p) + _nbytes(b1p) + _nbytes(w2p) + _nbytes(b2p))
           + tb * dh_p * 4)
    vmem_limit = int(min(64 * 2**20, max(32 * 2**20, 2 * est)))

    out_p = pl.pallas_call(
        fcnet_kernel,
        out_shape=jax.ShapeDtypeStruct((B, dout_p), x.dtype),
        grid_spec=pltpu.PrefetchScalarGridSpec(
            num_scalar_prefetch=0,
            grid=grid,
            in_specs=[
                pl.BlockSpec((tb, dim_in), lambda i: (i, 0)),     # x (full last dim)
                pl.BlockSpec((dim_in, dh_p), lambda i: (0, 0)),   # W1 (resident)
                pl.BlockSpec((1, dh_p), lambda i: (0, 0)),        # b1
                pl.BlockSpec((dh_p, dout_p), lambda i: (0, 0)),   # W2 (resident)
                pl.BlockSpec((1, dout_p), lambda i: (0, 0)),      # b2
            ],
            out_specs=pl.BlockSpec((tb, dout_p), lambda i: (i, 0)),
        ),
        compiler_params=pltpu.CompilerParams(
            dimension_semantics=("parallel",),   # shard batch tiles across TCs
            vmem_limit_bytes=vmem_limit,
        ),
    )(x, w1p, b1p, w2p, b2p)

    # Slice away the output lane padding (batch dim is unpadded).
    return out_p[:, :dim_out]


def init_params(key, dim_in=10, dim_hidden=20, dim_out=2):
    """Deterministic init mimicking nn.Linear's uniform(-1/sqrt(fan_in), +...)."""
    k1, k2, k3, k4 = jax.random.split(key, 4)
    s1 = 1.0 / jnp.sqrt(jnp.float32(dim_in))
    s2 = 1.0 / jnp.sqrt(jnp.float32(dim_hidden))
    w1 = jax.random.uniform(k1, (dim_hidden, dim_in), jnp.float32, -s1, s1)
    b1 = jax.random.uniform(k2, (dim_hidden,), jnp.float32, -s1, s1)
    w2 = jax.random.uniform(k3, (dim_out, dim_hidden), jnp.float32, -s2, s2)
    b2 = jax.random.uniform(k4, (dim_out,), jnp.float32, -s2, s2)
    return w1, b1, w2, b2


if __name__ == "__main__":
    key = jax.random.PRNGKey(0)
    kx, kp = jax.random.split(key)

    batch, dim_in, dim_hidden, dim_out = 8, 10, 20, 2
    x = jax.random.normal(kx, (batch, dim_in), dtype=jnp.float32)
    w1, b1, w2, b2 = init_params(kp, dim_in, dim_hidden, dim_out)

    # One-time weight packing (transpose + bf16 cast + lane padding).
    params = prepare_params(w1, b1, w2, b2)

    out = fcnet_forward(x, params)
    out = jax.block_until_ready(out)

    # Pure-JAX f32 reference (same semantics as the PyTorch forward).
    ref = jnp.maximum(x @ w1.T + b1, 0.0) @ w2.T + b2
    assert out.shape == (batch, dim_out)
    # bf16 matmul inputs + f32 accumulation -> ~1e-2-level agreement vs f32 ref.
    assert jnp.allclose(out, ref, atol=3e-2, rtol=3e-2), "mismatch vs reference"

    print("KERNEL_OK")
</pallas_src>

<mosaic_0001>
module attributes {stable_mosaic.version = 11 : i64} {
  func.func @fcnet_kernel(%arg0: i32, %arg1: memref<8x10xf32, #tpu.memory_space<vmem>>, %arg2: memref<10x128xbf16, #tpu.memory_space<vmem>>, %arg3: memref<1x128xf32, #tpu.memory_space<vmem>>, %arg4: memref<128x128xbf16, #tpu.memory_space<vmem>>, %arg5: memref<1x128xf32, #tpu.memory_space<vmem>>, %arg6: memref<8x128xf32, #tpu.memory_space<vmem>>) attributes {dimension_semantics = [#tpu.dimension_semantics<parallel>], iteration_bounds = array<i64: 1>, scalar_prefetch = 0 : i64, scratch_operands = 0 : i64, tpu.core_type = #tpu.core_type<tc>, window_params = [{transform_indices = @transform_0, window_bounds = array<i64: 8, 10>}, {pipeline_mode = #tpu.pipeline_mode<synchronous>, transform_indices = @transform_1, window_bounds = array<i64: 10, 128>}, {pipeline_mode = #tpu.pipeline_mode<synchronous>, transform_indices = @transform_2, window_bounds = array<i64: 1, 128>}, {pipeline_mode = #tpu.pipeline_mode<synchronous>, transform_indices = @transform_3, window_bounds = array<i64: 128, 128>}, {pipeline_mode = #tpu.pipeline_mode<synchronous>, transform_indices = @transform_4, window_bounds = array<i64: 1, 128>}, {transform_indices = @transform_5, window_bounds = array<i64: 8, 128>}]} {
    %c0 = arith.constant 0 : index
    %c0_0 = arith.constant 0 : index
    %0 = vector.load %arg1[%c0, %c0_0] : memref<8x10xf32, #tpu.memory_space<vmem>>, vector<8x10xf32>
    %1 = arith.truncf %0 : vector<8x10xf32> to vector<8x10xbf16>
    %c0_1 = arith.constant 0 : index
    %c0_2 = arith.constant 0 : index
    %2 = vector.load %arg2[%c0_1, %c0_2] : memref<10x128xbf16, #tpu.memory_space<vmem>>, vector<10x128xbf16>
    %cst = arith.constant dense<0.000000e+00> : vector<8x128xf32>
    %3 = tpu.matmul %1, %2, %cst {dimension_numbers = #tpu.dot_dimension_numbers<[1], [0], [0], [1], [0, 0, 1, 1], [], []>} : vector<8x10xbf16>, vector<10x128xbf16>, vector<8x128xf32> -> vector<8x128xf32>
    %c0_3 = arith.constant 0 : index
    %c0_4 = arith.constant 0 : index
    %4 = vector.load %arg3[%c0_3, %c0_4] : memref<1x128xf32, #tpu.memory_space<vmem>>, vector<1x128xf32>
    %5 = vector.broadcast %4 : vector<1x128xf32> to vector<8x128xf32>
    %6 = arith.addf %3, %5 : vector<8x128xf32>
    %cst_5 = arith.constant 0.000000e+00 : f32
    %7 = vector.broadcast %cst_5 : f32 to vector<8x128xf32>
    %8 = arith.maximumf %6, %7 : vector<8x128xf32>
    %9 = arith.truncf %8 : vector<8x128xf32> to vector<8x128xbf16>
    %c0_6 = arith.constant 0 : index
    %c0_7 = arith.constant 0 : index
    %10 = vector.load %arg4[%c0_6, %c0_7] : memref<128x128xbf16, #tpu.memory_space<vmem>>, vector<128x128xbf16>
    %cst_8 = arith.constant dense<0.000000e+00> : vector<8x128xf32>
    %11 = tpu.matmul %9, %10, %cst_8 {dimension_numbers = #tpu.dot_dimension_numbers<[1], [0], [0], [1], [0, 0, 1, 1], [], []>} : vector<8x128xbf16>, vector<128x128xbf16>, vector<8x128xf32> -> vector<8x128xf32>
    %c0_9 = arith.constant 0 : index
    %c0_10 = arith.constant 0 : index
    %12 = vector.load %arg5[%c0_9, %c0_10] : memref<1x128xf32, #tpu.memory_space<vmem>>, vector<1x128xf32>
    %13 = vector.broadcast %12 : vector<1x128xf32> to vector<8x128xf32>
    %14 = arith.addf %11, %13 : vector<8x128xf32>
    %c0_11 = arith.constant 0 : index
    %c0_12 = arith.constant 0 : index
    %15 = vector.load %arg6[%c0_11, %c0_12] : memref<8x128xf32, #tpu.memory_space<vmem>>, vector<8x128xf32>
    tpu.vector_store %arg6[%c0_11, %c0_12], %14 {strides = array<i32>} : memref<8x128xf32, #tpu.memory_space<vmem>>, vector<8x128xf32>,
    return
  }
  func.func @transform_0(%arg0: i32) -> (i32, i32) {
    %c0_i32 = arith.constant 0 : i32
    %c0_i32_0 = arith.constant 0 : i32
    return %arg0, %c0_i32 : i32, i32
  }
  func.func @transform_1(%arg0: i32) -> (i32, i32) {
    %c0_i32 = arith.constant 0 : i32
    %c0_i32_0 = arith.constant 0 : i32
    %c0_i32_1 = arith.constant 0 : i32
    return %c0_i32, %c0_i32_0 : i32, i32
  }
  func.func @transform_2(%arg0: i32) -> (i32, i32) {
    %c0_i32 = arith.constant 0 : i32
    %c0_i32_0 = arith.constant 0 : i32
    %c0_i32_1 = arith.constant 0 : i32
    return %c0_i32, %c0_i32_0 : i32, i32
  }
  func.func @transform_3(%arg0: i32) -> (i32, i32) {
    %c0_i32 = arith.constant 0 : i32
    %c0_i32_0 = arith.constant 0 : i32
    %c0_i32_1 = arith.constant 0 : i32
    return %c0_i32, %c0_i32_0 : i32, i32
  }
  func.func @transform_4(%arg0: i32) -> (i32, i32) {
    %c0_i32 = arith.constant 0 : i32
    %c0_i32_0 = arith.constant 0 : i32
    %c0_i32_1 = arith.constant 0 : i32
    return %c0_i32, %c0_i32_0 : i32, i32
  }
  func.func @transform_5(%arg0: i32) -> (i32, i32) {
    %c0_i32 = arith.constant 0 : i32
    %c0_i32_0 = arith.constant 0 : i32
    return %arg0, %c0_i32 : i32, i32
  }
}

</mosaic_0001>

<bundles_post_ra>
// kernel: tpu_custom_call.1
= control target key start
LH: loop header
LB: loop body
LE: loop exit
PB: predicated region body
PF: predicated region fallthrough
CT: control target
= control target key end

     0   :  { %10 = vsyncpa [#allocation3], 0  ;;  %s463_s0 = inlined_call_operand.hbm [shape: f32[8,10], index: 0, kind: input, shape index: {}]   ;;  %s464_s1 = inlined_call_operand.hbm [shape: bf16[10,128], index: 1, kind: input, shape index: {}]   ;;  %s465_s2 = inlined_call_operand.vmem [shape: f32[1,128], index: 2, kind: input, shape index: {}]   ;;  %s466_s3 = inlined_call_operand.hbm [shape: bf16[128,128], index: 3, kind: input, shape index: {}]   ;;  %s467_s4 = inlined_call_operand.vmem [shape: f32[1,128], index: 4, kind: input, shape index: {}]   ;;  %s468_s5 = inlined_call_operand.hbm [shape: f32[8,128], index: 5, kind: output, shape index: {}]  }
   0x1   :  { %11 = vsyncpa [#allocation6], 0 }
   0x2   :  { %12 = vsyncpa [#allocation4], 0  ;;  %s407_s18 = smov [#allocation5]  }
   0x3   :  { %s28_s19 = sshll.u32 %s407_s18, 4  ;;  %s29_s19 = int_to_ptr.vmem [resolvable:$true] %s28_s19 }
   0x4   :  { %s329_s20 = scalar_lea.vmem %s29_s19, 128  ;;  %p334_p1 = scmp.lt.s32.totalorder %s29_s19, %s29_s19 }
   0x5   :  { %p330_p0 = scmp.ne.s32.totalorder %s29_s19, %s329_s20  ;;  %p335_p2 = scmp.lt.s32.totalorder %s329_s20, %s329_s20 }
   0x7   :  { %p336_p3 = por %p335_p2, %p334_p1 }
   0x9   :  { %p337_p4 = pnand %p336_p3, %p330_p0 }
   0xb   :  { %340 = shalt.err (!%p337_p4)
}
   0xc   :  { %s408_s21 = smov 64   ;;  %s409_s22 = smov 4  }
   0xd   :  { %34 = dma.hbm_to_vmem [thread:$0]  %s464_s1, 128, %s29_s19, [#allocation6], %s408_s21, %s408_s21, %s409_s22  }
   0xe   :  { %s410_s25 = smov [#allocation2]   ;;  %s411_s27 = smov [#allocation7]  }
   0xf   :  { %s19_s26 = sshll.u32 %s410_s25, 4  ;;  %s42_s28 = sshll.u32 %s411_s27, 4  ;;  %s20_s26 = int_to_ptr.vmem [resolvable:$true] %s19_s26  ;;  %s43_s28 = int_to_ptr.vmem [resolvable:$true] %s42_s28 }
  0x10   :  { %s349_s29 = scalar_lea.vmem %s20_s26, 128  ;;  %p354_p6 = scmp.lt.s32.totalorder %s20_s26, %s20_s26 }
  0x11   :  { %p350_p5 = scmp.ne.s32.totalorder %s20_s26, %s349_s29  ;;  %p355_p7 = scmp.lt.s32.totalorder %s349_s29, %s349_s29 }
  0x13   :  { %p356_p8 = por %p355_p7, %p354_p6 }
  0x15   :  { %p357_p9 = pnand %p356_p8, %p350_p5 }
  0x17   :  { %360 = shalt.err (!%p357_p9)
}
  0x18   :  { %22 = dma.hbm_to_vmem [thread:$0]  %s463_s0, 128, %s20_s26, [#allocation3]  }
  0x19   :  { %s369_s7 = scalar_lea.vmem %s43_s28, 1024  ;;  %p374_p11 = scmp.lt.s32.totalorder %s43_s28, %s43_s28 }
  0x1a   :  { %p370_p10 = scmp.ne.s32.totalorder %s43_s28, %s369_s7  ;;  %p375_p12 = scmp.lt.s32.totalorder %s369_s7, %s369_s7 }
  0x1c   :  { %p376_p13 = por %p375_p12, %p374_p11 }
  0x1e   :  { %p377_p0 = pnand %p376_p13, %p370_p10 }
  0x20   :  { %380 = shalt.err (!%p377_p0)
}
  0x21   :  { %48 = dma.hbm_to_vmem [thread:$0]  %s466_s3, 1024, %s43_s28, [#allocation6], %s408_s21, %s408_s21, %s409_s22  }
  0x22   :  { %401 = dma.done.wait [#allocation3], 128  }
  0x23   :  { %402 = vsyncadd [#allocation3], 4294967168 }
  0x24   :  { %403 = dma.done.wait [#allocation6], 1152  }
  0x25   :  { %404 = vsyncadd [#allocation6], 4294966144  ;;  %v412_v0 = vmov 0.0   ;;  %vm413_vm0 = vmmov 0   ;;  %vm81_vm1 = vcmask 1044480   ;;  %v61_v2 = vld [vmem:[#allocation2] sm:$0xff] }
  0x26   :  { %278 = vmatprep.subr.bf16.mxu0 %v412_v0  ;;  %280 = vmatprep.mubr.msk.bf16.mxu0 %vm413_vm0, %v412_v0  ;;  %v312_v1 = vld [vmem:[#allocation5] sm:$0x1f]   ;;  %v62_v4 = vpack.c.bf16 %v61_v2, %v61_v2  ;;  %vm77_vm2 = vcmask 80896   ;;  %v314_v6 = vld [vmem:[#allocation7 + $0x30] sm:$0xff]   ;;  %v315_v7 = vld [vmem:[#allocation7 + $0x28] sm:$0xff]   ;;  %s414_s11 = smov [#allocation8]  }
  0x27   :  { %284 = vmatprep.subr.bf16.mxu1 %v412_v0  ;;  %300 = vmatprep.mubr.msk.bf16.mxu1 %vm413_vm0, %v412_v0  ;;  %v83_v3 = vsel %vm81_vm1, %v312_v1, 0  ;;  %v313_v5 = vld [vmem:[#allocation7 + $0x38] sm:$0xff]   ;;  %v316_v8 = vld [vmem:[#allocation7 + $0x20] sm:$0xff]   ;;  %v318_v10 = vld [vmem:[#allocation7 + $0x10] sm:$0xff]   ;;  %s245_s12 = sshll.u32 %s414_s11, 4  ;;  %s246_s12 = int_to_ptr.vmem [resolvable:$true] %s245_s12 }
  0x28   :  { %279 = vmatpush3.bf16.msra.mxu0 %v83_v3  ;;  %285 = vmatpush3.bf16.msra.mxu1 %v313_v5  ;;  %v317_v9 = vld [vmem:[#allocation7 + $0x18] sm:$0xff]   ;;  %v319_v11 = vld [vmem:[#allocation7 + $0x8] sm:$0xff]   ;;  %v320_v12 = vld [vmem:[#allocation7] sm:$0xff]   ;;  %p386_p2 = scmp.lt.s32.totalorder %s246_s12, %s246_s12 }
  0x29   :  { %286 = vmatprep.subr.bf16.mxu1 %v412_v0  ;;  %v255_v13 = vld [vmem:[%s465_s2] ss:$0 sm:$0xff]  ;;  %s381_s2 = scalar_lea.vmem %s246_s12, 128 }
  0x2a   :  { %v258_v21 = vld [vmem:[%s467_s4] ss:$0 sm:$0xff]  ;;  %p382_p1 = scmp.ne.s32.totalorder %s246_s12, %s381_s2  ;;  %p387_p3 = scmp.lt.s32.totalorder %s381_s2, %s381_s2 }
  0x2b   :  { %281 = vmatmul.mubr.msk.bf16.vlgmr.msra.gmra.mxu0 %vm77_vm2, %v62_v4 }
  0x2c   :  { %287 = vmatpush3.bf16.msra.mxu1 %v314_v6  ;;  %p388_p4 = por %p387_p3, %p386_p2 }
  0x2d   :  { %288 = vmatprep.subr.bf16.mxu1 %v412_v0 }
  0x2e   :  { %p389_p5 = pnand %p388_p4, %p382_p1 }
  0x30   :  { %289 = vmatpush3.bf16.msra.mxu1 %v315_v7 }
  0x31   :  { %290 = vmatprep.subr.bf16.mxu1 %v412_v0 }
  0x34   :  { %291 = vmatpush3.bf16.msra.mxu1 %v316_v8 }
  0x35   :  { %292 = vmatprep.subr.bf16.mxu1 %v412_v0 }
  0x38   :  { %293 = vmatpush3.bf16.msra.mxu1 %v317_v9 }
  0x39   :  { %294 = vmatprep.subr.bf16.mxu1 %v412_v0 }
  0x3c   :  { %295 = vmatpush3.bf16.msra.mxu1 %v318_v10 }
  0x3d   :  { %296 = vmatprep.subr.bf16.mxu1 %v412_v0 }
  0x40   :  { %297 = vmatpush3.bf16.msra.mxu1 %v319_v11 }
  0x41   :  { %298 = vmatprep.subr.bf16.mxu1 %v412_v0 }
  0x44   :  { %299 = vmatpush3.bf16.msra.mxu1 %v320_v12 }
  0xeb   :  { %v119_v14 = vpop.f32.mrf.mxu0 }
  0xec   :  { %v120_v15 = vadd.f32 %v255_v13, %v119_v14 }
  0xed   :  { %v282_v16 = vpop.f32.mrf.mxu0 }
  0xee   :  { %v125_v17 = vmax.f32 %v120_v15, 0.0 }
  0xef   :  { %v122_v18 = vpop.f32.mrf.mxu0 }
  0xf0   :  { %v126_v19 = vpack.c.bf16 %v125_v17, %v125_v17 }
  0xf1   :  { %v283_v20 = vpop.f32.mrf.mxu0 }
  0xf2   :  { %301 = vmatmul.mubr.bf16.vlgmr.msra.gmra.mxu1 %v126_v19 }
 0x1b2   :  { %v232_v22 = vpop.f32.mrf.mxu1 }
 0x1b3   :  { %v233_v23 = vadd.f32 %v258_v21, %v232_v22 }
 0x1b4   :  { %v302_v24 = vpop.f32.mrf.mxu1 }
 0x1b5   :  { %238 = vst [vmem:[#allocation8] sm:$0xff] %v233_v23 }
 0x1b6   :  { %v235_v25 = vpop.f32.mrf.mxu1 }
 0x1b7   :  { %392 = shalt.err (!%p389_p5)
}
 0x1b8   :  { %248 = dma.vmem_to_hbm [thread:$0]  %s246_s12, 128, %s468_s5, [#allocation4]   ;;  %v303_v26 = vpop.f32.mrf.mxu1 }
 0x1b9   :  { %405 = dma.done.wait [#allocation4], 128  }
 0x1ba   :  { %406 = vsyncadd [#allocation4], 4294967168 }
 0x1bb   :  { %252 = vsyncpa [#allocation3], 1 }
 0x1bc   :  { %253 = vsyncpa [#allocation6], 1 }
 0x1bd   :  { %254 = vsyncpa [#allocation4], 1 }

</bundles_post_ra>
